<compile_context>
chip_gen: v7x
topology: tpu7x:2x2x1
jax: 0.10.0
libtpu: 0.0.40
codegen_flags: <defaults>
</compile_context>

<pallas_src>
import numpy as np
import jax
import jax.numpy as jnp
from jax.experimental import pallas as pl
from jax.experimental.pallas import tpu as pltpu

LANE = 128  # pad MLP K/N dims to multiples of this (native on v5e/v6e/v7x)


def _round_up(x, m):
    return ((x + m - 1) // m) * m


# ----------------------------------------------------------------------------------
# Pallas kernel: pure padded MLP on one batch tile (feature layer folded into W0)
# ----------------------------------------------------------------------------------
def _mlp_kernel(x_ref, *refs):
    """x_ref : (TB, K0p) bf16 -- lane-dense, zero-padded flattened ext window.
    refs   : (w0, b0, w1, b1, ..., wn, bn, out_ref); weights bf16 (K/N padded to
             128 multiples), biases f32 (1, Np).  Feature-layer linear map, 1/w
             scaling and all zero padding are folded into the weights wrapper-side.
    """
    out_ref = refs[-1]
    wb = refs[:-1]
    n_layers = len(wb) // 2

    h = x_ref[...]                                        # bf16 matmul operand
    for i in range(n_layers):
        w_ref = wb[2 * i]
        b_ref = wb[2 * i + 1]
        acc = jnp.dot(h, w_ref[...], preferred_element_type=jnp.float32)
        acc = acc + b_ref[...]                            # f32 elementwise (v5e-safe)
        if i < n_layers - 1:
            acc = jnp.maximum(acc, 0.0)                   # ReLU in f32
            h = acc.astype(jnp.bfloat16)                  # bf16 only as MXU operand
        else:
            h = acc
        # dropout: eval-mode identity
    out_ref[...] = h.astype(out_ref.dtype)                # lane-dense bf16 store


# ----------------------------------------------------------------------------------
# Wrapper-side feature-layer fold: T maps flattened ext -> flattened df features
# ----------------------------------------------------------------------------------
def _build_feature_matrix(windows, window_size, input_dim, hist):
    """T : (E*D, W*nb*D), f32.  ext row-major flatten (time, channel); feature
    layout time-major with per-timestep blocks [raw, mean(w_1), mean(w_2), ...]."""
    W, D = window_size, input_dim
    nb = 1 + len(windows)
    E = hist + W
    T = np.zeros((E * D, W * nb * D), dtype=np.float32)
    for t in range(W):
        pos = hist + t
        for d in range(D):
            T[pos * D + d, (t * nb) * D + d] = 1.0        # raw passthrough
        for j, w in enumerate(windows, start=1):
            s = 1.0 / float(w)
            for k in range(w):
                src = pos - k                             # >= 0 since hist = maxw-1
                for d in range(D):
                    T[src * D + d, (t * nb + j) * D + d] += s
    return T


def _prepare_params(params, *, windows, window_size, input_dim, hist, lane=LANE):
    """Fold feature layer into W0, pad all K/N to lane multiples, weights -> bf16."""
    W, D = window_size, input_dim
    nb = 1 + len(windows)
    K0 = W * nb * D
    E = hist + W

    w0, b0 = params[0]
    assert w0.shape[0] == K0, (w0.shape, K0)

    T = jnp.asarray(_build_feature_matrix(windows, W, D, hist))   # (E*D, K0)
    w0_folded = T @ w0                                            # (E*D, N0) f32

    all_params = [(w0_folded, b0)] + list(params[1:])

    prepared = []
    kin_p = _round_up(E * D, lane)
    K0p = kin_p
    for (w_mat, b_vec) in all_params:
        k, n = w_mat.shape
        kp, np_ = kin_p, _round_up(n, lane)
        w_pad = jnp.zeros((kp, np_), jnp.float32).at[:k, :n].set(w_mat)
        b_pad = jnp.zeros((1, np_), jnp.float32).at[:, :n].set(
            jnp.reshape(b_vec, (1, n)))
        prepared.append(w_pad.astype(jnp.bfloat16))
        prepared.append(b_pad)
        kin_p = np_
    return prepared, K0p, kin_p                            # params, K0p, padded out dim


# ----------------------------------------------------------------------------------
# Wrapper: history gather, lane-dense reshape, batch tiling, pallas_call
# ----------------------------------------------------------------------------------
def dfdnn_forward(x, full_buffer, indices, params, *,
                  windows, window_size, output_size, batch_tile=512):
    B, W, D = x.shape
    assert W == window_size, f"Input sequence is not of window size ({window_size})"
    windows = tuple(int(w) for w in windows)
    maxw = max(windows) if windows else 1
    hist = maxw - 1
    series_len = full_buffer.shape[0]

    # history gather: full_buffer[start-hist : start], zero padded (pad_mode='zeros')
    if hist > 0:
        starts = indices[:, 0].astype(jnp.int32)
        offs = jnp.arange(hist, dtype=jnp.int32)[None, :]
        idx = starts[:, None] - hist + offs
        valid = (idx >= 0) & (idx < series_len)
        gathered = full_buffer[jnp.clip(idx, 0, series_len - 1)]
        gathered = jnp.where(valid[..., None], gathered, 0.0)
        ext = jnp.concatenate([gathered, x], axis=1)
    else:
        ext = x
    E = ext.shape[1]

    flat_params, K0p, OUTp = _prepare_params(
        params, windows=windows, window_size=W, input_dim=D, hist=hist)

    # lane-dense flattened input, zero-padded to K0p columns
    ext_flat = ext.reshape(B, E * D).astype(jnp.float32)
    if K0p > E * D:
        ext_flat = jnp.concatenate(
            [ext_flat, jnp.zeros((B, K0p - E * D), jnp.float32)], axis=-1)

    # batch tiling: clamp tile for tiny batches, grow for large ones
    TB = int(min(batch_tile, _round_up(max(B, 1), 8)))
    Bp = _round_up(max(B, 1), TB)
    if Bp > B:
        ext_flat = jnp.concatenate(
            [ext_flat, jnp.zeros((Bp - B, K0p), jnp.float32)], axis=0)
    ext_bf16 = ext_flat.astype(jnp.bfloat16)
    grid = (Bp // TB,)

    weight_bytes = sum(int(p.size) * p.dtype.itemsize for p in flat_params)
    flops = sum(2 * Bp * w.shape[0] * w.shape[1] for w in flat_params[::2])
    bytes_acc = Bp * K0p * 2 + weight_bytes + Bp * OUTp * 2
    max_n = max(int(w.shape[1]) for w in flat_params[::2])
    vmem_est = (2 * TB * K0p * 2          # input tile, double buffered, bf16
                + 2 * TB * OUTp * 2       # output tile, double buffered, bf16
                + weight_bytes            # resident weights/biases
                + 4 * TB * max_n * 4)     # live f32 intermediates (headroom)
    vmem_limit = int(min(max(2 * vmem_est, 32 * 1024 * 1024), 100 * 1024 * 1024))

    def _run(single_buffer_weights):
        in_specs = [pl.BlockSpec((TB, K0p), lambda i: (i, 0))]
        for p in flat_params:
            if single_buffer_weights:
                spec = pl.BlockSpec(p.shape, lambda i: (0, 0),
                                    pipeline_mode=pl.Buffered(1))
            else:
                spec = pl.BlockSpec(p.shape, lambda i: (0, 0))
            in_specs.append(spec)
        return pl.pallas_call(
            _mlp_kernel,
            out_shape=jax.ShapeDtypeStruct((Bp, OUTp), jnp.bfloat16),
            grid=grid,
            in_specs=in_specs,
            out_specs=pl.BlockSpec((TB, OUTp), lambda i: (i, 0)),
            compiler_params=pltpu.CompilerParams(
                dimension_semantics=("parallel",),
                vmem_limit_bytes=vmem_limit),
            cost_estimate=pl.CostEstimate(
                flops=int(flops), transcendentals=0,
                bytes_accessed=int(bytes_acc)),
        )(ext_bf16, *flat_params)

    try:
        out_padded = _run(True)            # single-buffered resident weights
    except Exception:
        # TODO(synk): pl.Buffered(1) unsupported in this JAX build; default buffering.
        out_padded = _run(False)

    out = out_padded[:B, :output_size].astype(jnp.float32)
    return out[:, :, None]                                  # (B, output_size, 1)


# ----------------------------------------------------------------------------------
# Pure-JAX f32 reference (assumed module semantics) for correctness checking
# ----------------------------------------------------------------------------------
def dfdnn_reference(x, full_buffer, indices, params, *, windows, window_size):
    B, W, D = x.shape
    maxw = max(windows) if windows else 1
    hist = maxw - 1
    series_len = full_buffer.shape[0]
    if hist > 0:
        starts = indices[:, 0].astype(jnp.int32)
        offs = jnp.arange(hist, dtype=jnp.int32)[None, :]
        idx = starts[:, None] - hist + offs
        valid = (idx >= 0) & (idx < series_len)
        gathered = full_buffer[jnp.clip(idx, 0, series_len - 1)]
        gathered = jnp.where(valid[..., None], gathered, 0.0)
        ext = jnp.concatenate([gathered, x], axis=1).astype(jnp.float32)
    else:
        ext = x.astype(jnp.float32)
    raw = ext[:, hist:, :]
    feats = [raw]
    for w in windows:
        acc = jnp.zeros_like(raw)
        for k in range(w):
            s = hist - k
            acc = acc + ext[:, s:s + W, :]
        feats.append(acc / float(w))
    f = jnp.concatenate(feats, axis=-1)
    h = f.reshape(B, -1)
    n = len(params)
    for i, (w_mat, b_vec) in enumerate(params):
        h = h @ w_mat + b_vec.reshape(1, -1)
        if i < n - 1:
            h = jnp.maximum(h, 0.0)
    return h[:, :, None]


def make_params(key, in_dim, hidden_size_fac, hidden_layers, output_size):
    hidden = int(in_dim * hidden_size_fac)
    dims = [in_dim] + [hidden] * hidden_layers + [output_size]
    params = []
    for i in range(len(dims) - 1):
        key, kw, kb = jax.random.split(key, 3)
        w = jax.random.normal(kw, (dims[i], dims[i + 1]), jnp.float32) / jnp.sqrt(
            jnp.float32(dims[i]))
        b = 0.1 * jax.random.normal(kb, (1, dims[i + 1]), jnp.float32)
        params.append((w, b))
    return params


if __name__ == "__main__":
    batch = 2
    window_size = 8          # seq_len
    input_size = 4           # input_dim
    series_len = 32
    feature_config = [2, 4]  # rolling-mean window lengths
    hidden_size_fac = 0.5
    hidden_layers = 2
    output_size = 3

    df_output_dim = input_size * (1 + len(feature_config))
    mlp_in = df_output_dim * window_size

    key = jax.random.PRNGKey(0)
    k_buf, k_par = jax.random.split(key)

    full_buffer = jax.random.normal(k_buf, (series_len, input_size), jnp.float32)
    starts = jnp.array([2, 20], dtype=jnp.int32)
    indices = jnp.stack([starts, starts + window_size], axis=1)   # (B, 2)
    x = jnp.stack(
        [jax.lax.dynamic_slice(full_buffer, (s, 0), (window_size, input_size))
         for s in (2, 20)],
        axis=0,
    )                                                             # (B, W, D)

    params = make_params(k_par, mlp_in, hidden_size_fac, hidden_layers, output_size)

    out = dfdnn_forward(
        x, full_buffer, indices, params,
        windows=feature_config, window_size=window_size, output_size=output_size,
    )
    out = jax.block_until_ready(out)
    assert out.shape == (batch, output_size, 1), out.shape

    ref = dfdnn_reference(
        x, full_buffer, indices, params,
        windows=feature_config, window_size=window_size,
    )
    np.testing.assert_allclose(np.asarray(out), np.asarray(ref),
                               rtol=3e-2, atol=6e-2)  # bf16 MXU tolerance
    print("KERNEL_OK")
</pallas_src>

<mosaic_0001>
module attributes {stable_mosaic.version = 11 : i64} {
  func.func @_mlp_kernel(%arg0: i32, %arg1: memref<8x128xbf16, #tpu.memory_space<vmem>>, %arg2: memref<128x128xbf16, #tpu.memory_space<vmem>>, %arg3: memref<1x128xf32, #tpu.memory_space<vmem>>, %arg4: memref<128x128xbf16, #tpu.memory_space<vmem>>, %arg5: memref<1x128xf32, #tpu.memory_space<vmem>>, %arg6: memref<128x128xbf16, #tpu.memory_space<vmem>>, %arg7: memref<1x128xf32, #tpu.memory_space<vmem>>, %arg8: memref<8x128xbf16, #tpu.memory_space<vmem>>) attributes {dimension_semantics = [#tpu.dimension_semantics<parallel>], iteration_bounds = array<i64: 1>, scalar_prefetch = 0 : i64, scratch_operands = 0 : i64, tpu.core_type = #tpu.core_type<tc>, window_params = [{transform_indices = @transform_0, window_bounds = array<i64: 8, 128>}, {pipeline_mode = #tpu.pipeline_mode<synchronous>, transform_indices = @transform_1, window_bounds = array<i64: 128, 128>}, {pipeline_mode = #tpu.pipeline_mode<synchronous>, transform_indices = @transform_2, window_bounds = array<i64: 1, 128>}, {pipeline_mode = #tpu.pipeline_mode<synchronous>, transform_indices = @transform_3, window_bounds = array<i64: 128, 128>}, {pipeline_mode = #tpu.pipeline_mode<synchronous>, transform_indices = @transform_4, window_bounds = array<i64: 1, 128>}, {pipeline_mode = #tpu.pipeline_mode<synchronous>, transform_indices = @transform_5, window_bounds = array<i64: 128, 128>}, {pipeline_mode = #tpu.pipeline_mode<synchronous>, transform_indices = @transform_6, window_bounds = array<i64: 1, 128>}, {transform_indices = @transform_7, window_bounds = array<i64: 8, 128>}]} {
    %c0 = arith.constant 0 : index
    %c0_0 = arith.constant 0 : index
    %0 = vector.load %arg1[%c0, %c0_0] : memref<8x128xbf16, #tpu.memory_space<vmem>>, vector<8x128xbf16>
    %c0_1 = arith.constant 0 : index
    %c0_2 = arith.constant 0 : index
    %1 = vector.load %arg2[%c0_1, %c0_2] : memref<128x128xbf16, #tpu.memory_space<vmem>>, vector<128x128xbf16>
    %cst = arith.constant dense<0.000000e+00> : vector<8x128xf32>
    %2 = tpu.matmul %0, %1, %cst {dimension_numbers = #tpu.dot_dimension_numbers<[1], [0], [0], [1], [0, 0, 1, 1], [], []>} : vector<8x128xbf16>, vector<128x128xbf16>, vector<8x128xf32> -> vector<8x128xf32>
    %c0_3 = arith.constant 0 : index
    %c0_4 = arith.constant 0 : index
    %3 = vector.load %arg3[%c0_3, %c0_4] : memref<1x128xf32, #tpu.memory_space<vmem>>, vector<1x128xf32>
    %4 = vector.broadcast %3 : vector<1x128xf32> to vector<8x128xf32>
    %5 = arith.addf %2, %4 : vector<8x128xf32>
    %cst_5 = arith.constant 0.000000e+00 : f32
    %6 = vector.broadcast %cst_5 : f32 to vector<8x128xf32>
    %7 = arith.maximumf %5, %6 : vector<8x128xf32>
    %8 = arith.truncf %7 : vector<8x128xf32> to vector<8x128xbf16>
    %c0_6 = arith.constant 0 : index
    %c0_7 = arith.constant 0 : index
    %9 = vector.load %arg4[%c0_6, %c0_7] : memref<128x128xbf16, #tpu.memory_space<vmem>>, vector<128x128xbf16>
    %cst_8 = arith.constant dense<0.000000e+00> : vector<8x128xf32>
    %10 = tpu.matmul %8, %9, %cst_8 {dimension_numbers = #tpu.dot_dimension_numbers<[1], [0], [0], [1], [0, 0, 1, 1], [], []>} : vector<8x128xbf16>, vector<128x128xbf16>, vector<8x128xf32> -> vector<8x128xf32>
    %c0_9 = arith.constant 0 : index
    %c0_10 = arith.constant 0 : index
    %11 = vector.load %arg5[%c0_9, %c0_10] : memref<1x128xf32, #tpu.memory_space<vmem>>, vector<1x128xf32>
    %12 = vector.broadcast %11 : vector<1x128xf32> to vector<8x128xf32>
    %13 = arith.addf %10, %12 : vector<8x128xf32>
    %cst_11 = arith.constant 0.000000e+00 : f32
    %14 = vector.broadcast %cst_11 : f32 to vector<8x128xf32>
    %15 = arith.maximumf %13, %14 : vector<8x128xf32>
    %16 = arith.truncf %15 : vector<8x128xf32> to vector<8x128xbf16>
    %c0_12 = arith.constant 0 : index
    %c0_13 = arith.constant 0 : index
    %17 = vector.load %arg6[%c0_12, %c0_13] : memref<128x128xbf16, #tpu.memory_space<vmem>>, vector<128x128xbf16>
    %cst_14 = arith.constant dense<0.000000e+00> : vector<8x128xf32>
    %18 = tpu.matmul %16, %17, %cst_14 {dimension_numbers = #tpu.dot_dimension_numbers<[1], [0], [0], [1], [0, 0, 1, 1], [], []>} : vector<8x128xbf16>, vector<128x128xbf16>, vector<8x128xf32> -> vector<8x128xf32>
    %c0_15 = arith.constant 0 : index
    %c0_16 = arith.constant 0 : index
    %19 = vector.load %arg7[%c0_15, %c0_16] : memref<1x128xf32, #tpu.memory_space<vmem>>, vector<1x128xf32>
    %20 = vector.broadcast %19 : vector<1x128xf32> to vector<8x128xf32>
    %21 = arith.addf %18, %20 : vector<8x128xf32>
    %22 = arith.truncf %21 : vector<8x128xf32> to vector<8x128xbf16>
    %c0_17 = arith.constant 0 : index
    %c0_18 = arith.constant 0 : index
    %23 = vector.load %arg8[%c0_17, %c0_18] : memref<8x128xbf16, #tpu.memory_space<vmem>>, vector<8x128xbf16>
    tpu.vector_store %arg8[%c0_17, %c0_18], %22 {strides = array<i32>} : memref<8x128xbf16, #tpu.memory_space<vmem>>, vector<8x128xbf16>,
    return
  }
  func.func @transform_0(%arg0: i32) -> (i32, i32) {
    %c0_i32 = arith.constant 0 : i32
    %c0_i32_0 = arith.constant 0 : i32
    return %arg0, %c0_i32 : i32, i32
  }
  func.func @transform_1(%arg0: i32) -> (i32, i32) {
    %c0_i32 = arith.constant 0 : i32
    %c0_i32_0 = arith.constant 0 : i32
    %c0_i32_1 = arith.constant 0 : i32
    return %c0_i32, %c0_i32_0 : i32, i32
  }
  func.func @transform_2(%arg0: i32) -> (i32, i32) {
    %c0_i32 = arith.constant 0 : i32
    %c0_i32_0 = arith.constant 0 : i32
    %c0_i32_1 = arith.constant 0 : i32
    return %c0_i32, %c0_i32_0 : i32, i32
  }
  func.func @transform_3(%arg0: i32) -> (i32, i32) {
    %c0_i32 = arith.constant 0 : i32
    %c0_i32_0 = arith.constant 0 : i32
    %c0_i32_1 = arith.constant 0 : i32
    return %c0_i32, %c0_i32_0 : i32, i32
  }
  func.func @transform_4(%arg0: i32) -> (i32, i32) {
    %c0_i32 = arith.constant 0 : i32
    %c0_i32_0 = arith.constant 0 : i32
    %c0_i32_1 = arith.constant 0 : i32
    return %c0_i32, %c0_i32_0 : i32, i32
  }
  func.func @transform_5(%arg0: i32) -> (i32, i32) {
    %c0_i32 = arith.constant 0 : i32
    %c0_i32_0 = arith.constant 0 : i32
    %c0_i32_1 = arith.constant 0 : i32
    return %c0_i32, %c0_i32_0 : i32, i32
  }
  func.func @transform_6(%arg0: i32) -> (i32, i32) {
    %c0_i32 = arith.constant 0 : i32
    %c0_i32_0 = arith.constant 0 : i32
    %c0_i32_1 = arith.constant 0 : i32
    return %c0_i32, %c0_i32_0 : i32, i32
  }
  func.func @transform_7(%arg0: i32) -> (i32, i32) {
    %c0_i32 = arith.constant 0 : i32
    %c0_i32_0 = arith.constant 0 : i32
    return %arg0, %c0_i32 : i32, i32
  }
}

module attributes {stable_mosaic.version = 11 : i64} {
  func.func @_mlp_kernel(%arg0: i32, %arg1: memref<8x128xbf16, #tpu.memory_space<vmem>>, %arg2: memref<128x128xbf16, #tpu.memory_space<vmem>>, %arg3: memref<1x128xf32, #tpu.memory_space<vmem>>, %arg4: memref<128x128xbf16, #tpu.memory_space<vmem>>, %arg5: memref<1x128xf32, #tpu.memory_space<vmem>>, %arg6: memref<128x128xbf16, #tpu.memory_space<vmem>>, %arg7: memref<1x128xf32, #tpu.memory_space<vmem>>, %arg8: memref<8x128xbf16, #tpu.memory_space<vmem>>) attributes {dimension_semantics = [#tpu.dimension_semantics<parallel>], iteration_bounds = array<i64: 1>, scalar_prefetch = 0 : i64, scratch_operands = 0 : i64, tpu.core_type = #tpu.core_type<tc>, window_params = [{transform_indices = @transform_0, window_bounds = array<i64: 8, 128>}, {pipeline_mode = #tpu.pipeline_mode<synchronous>, transform_indices = @transform_1, window_bounds = array<i64: 128, 128>}, {pipeline_mode = #tpu.pipeline_mode<synchronous>, transform_indices = @transform_2, window_bounds = array<i64: 1, 128>}, {pipeline_mode = #tpu.pipeline_mode<synchronous>, transform_indices = @transform_3, window_bounds = array<i64: 128, 128>}, {pipeline_mode = #tpu.pipeline_mode<synchronous>, transform_indices = @transform_4, window_bounds = array<i64: 1, 128>}, {pipeline_mode = #tpu.pipeline_mode<synchronous>, transform_indices = @transform_5, window_bounds = array<i64: 128, 128>}, {pipeline_mode = #tpu.pipeline_mode<synchronous>, transform_indices = @transform_6, window_bounds = array<i64: 1, 128>}, {transform_indices = @transform_7, window_bounds = array<i64: 8, 128>}]} {
    %c0 = arith.constant 0 : index
    %c0_0 = arith.constant 0 : index
    %0 = vector.load %arg1[%c0, %c0_0] : memref<8x128xbf16, #tpu.memory_space<vmem>>, vector<8x128xbf16>
    %c0_1 = arith.constant 0 : index
    %c0_2 = arith.constant 0 : index
    %1 = vector.load %arg2[%c0_1, %c0_2] : memref<128x128xbf16, #tpu.memory_space<vmem>>, vector<128x128xbf16>
    %cst = arith.constant dense<0.000000e+00> : vector<8x128xf32>
    %2 = tpu.matmul %0, %1, %cst {dimension_numbers = #tpu.dot_dimension_numbers<[1], [0], [0], [1], [0, 0, 1, 1], [], []>} : vector<8x128xbf16>, vector<128x128xbf16>, vector<8x128xf32> -> vector<8x128xf32>
    %c0_3 = arith.constant 0 : index
    %c0_4 = arith.constant 0 : index
    %3 = vector.load %arg3[%c0_3, %c0_4] : memref<1x128xf32, #tpu.memory_space<vmem>>, vector<1x128xf32>
    %4 = vector.broadcast %3 : vector<1x128xf32> to vector<8x128xf32>
    %5 = arith.addf %2, %4 : vector<8x128xf32>
    %cst_5 = arith.constant 0.000000e+00 : f32
    %6 = vector.broadcast %cst_5 : f32 to vector<8x128xf32>
    %7 = arith.maximumf %5, %6 : vector<8x128xf32>
    %8 = arith.truncf %7 : vector<8x128xf32> to vector<8x128xbf16>
    %c0_6 = arith.constant 0 : index
    %c0_7 = arith.constant 0 : index
    %9 = vector.load %arg4[%c0_6, %c0_7] : memref<128x128xbf16, #tpu.memory_space<vmem>>, vector<128x128xbf16>
    %cst_8 = arith.constant dense<0.000000e+00> : vector<8x128xf32>
    %10 = tpu.matmul %8, %9, %cst_8 {dimension_numbers = #tpu.dot_dimension_numbers<[1], [0], [0], [1], [0, 0, 1, 1], [], []>} : vector<8x128xbf16>, vector<128x128xbf16>, vector<8x128xf32> -> vector<8x128xf32>
    %c0_9 = arith.constant 0 : index
    %c0_10 = arith.constant 0 : index
    %11 = vector.load %arg5[%c0_9, %c0_10] : memref<1x128xf32, #tpu.memory_space<vmem>>, vector<1x128xf32>
    %12 = vector.broadcast %11 : vector<1x128xf32> to vector<8x128xf32>
    %13 = arith.addf %10, %12 : vector<8x128xf32>
    %cst_11 = arith.constant 0.000000e+00 : f32
    %14 = vector.broadcast %cst_11 : f32 to vector<8x128xf32>
    %15 = arith.maximumf %13, %14 : vector<8x128xf32>
    %16 = arith.truncf %15 : vector<8x128xf32> to vector<8x128xbf16>
    %c0_12 = arith.constant 0 : index
    %c0_13 = arith.constant 0 : index
    %17 = vector.load %arg6[%c0_12, %c0_13] : memref<128x128xbf16, #tpu.memory_space<vmem>>, vector<128x128xbf16>
    %cst_14 = arith.constant dense<0.000000e+00> : vector<8x128xf32>
    %18 = tpu.matmul %16, %17, %cst_14 {dimension_numbers = #tpu.dot_dimension_numbers<[1], [0], [0], [1], [0, 0, 1, 1], [], []>} : vector<8x128xbf16>, vector<128x128xbf16>, vector<8x128xf32> -> vector<8x128xf32>
    %c0_15 = arith.constant 0 : index
    %c0_16 = arith.constant 0 : index
    %19 = vector.load %arg7[%c0_15, %c0_16] : memref<1x128xf32, #tpu.memory_space<vmem>>, vector<1x128xf32>
    %20 = vector.broadcast %19 : vector<1x128xf32> to vector<8x128xf32>
    %21 = arith.addf %18, %20 : vector<8x128xf32>
    %22 = arith.truncf %21 : vector<8x128xf32> to vector<8x128xbf16>
    %c0_17 = arith.constant 0 : index
    %c0_18 = arith.constant 0 : index
    %23 = vector.load %arg8[%c0_17, %c0_18] : memref<8x128xbf16, #tpu.memory_space<vmem>>, vector<8x128xbf16>
    tpu.vector_store %arg8[%c0_17, %c0_18], %22 {strides = array<i32>} : memref<8x128xbf16, #tpu.memory_space<vmem>>, vector<8x128xbf16>,
    return
  }
  func.func @transform_0(%arg0: i32) -> (i32, i32) {
    %c0_i32 = arith.constant 0 : i32
    %c0_i32_0 = arith.constant 0 : i32
    return %arg0, %c0_i32 : i32, i32
  }
  func.func @transform_1(%arg0: i32) -> (i32, i32) {
    %c0_i32 = arith.constant 0 : i32
    %c0_i32_0 = arith.constant 0 : i32
    %c0_i32_1 = arith.constant 0 : i32
    return %c0_i32, %c0_i32_0 : i32, i32
  }
  func.func @transform_2(%arg0: i32) -> (i32, i32) {
    %c0_i32 = arith.constant 0 : i32
    %c0_i32_0 = arith.constant 0 : i32
    %c0_i32_1 = arith.constant 0 : i32
    return %c0_i32, %c0_i32_0 : i32, i32
  }
  func.func @transform_3(%arg0: i32) -> (i32, i32) {
    %c0_i32 = arith.constant 0 : i32
    %c0_i32_0 = arith.constant 0 : i32
    %c0_i32_1 = arith.constant 0 : i32
    return %c0_i32, %c0_i32_0 : i32, i32
  }
  func.func @transform_4(%arg0: i32) -> (i32, i32) {
    %c0_i32 = arith.constant 0 : i32
    %c0_i32_0 = arith.constant 0 : i32
    %c0_i32_1 = arith.constant 0 : i32
    return %c0_i32, %c0_i32_0 : i32, i32
  }
  func.func @transform_5(%arg0: i32) -> (i32, i32) {
    %c0_i32 = arith.constant 0 : i32
    %c0_i32_0 = arith.constant 0 : i32
    %c0_i32_1 = arith.constant 0 : i32
    return %c0_i32, %c0_i32_0 : i32, i32
  }
  func.func @transform_6(%arg0: i32) -> (i32, i32) {
    %c0_i32 = arith.constant 0 : i32
    %c0_i32_0 = arith.constant 0 : i32
    %c0_i32_1 = arith.constant 0 : i32
    return %c0_i32, %c0_i32_0 : i32, i32
  }
  func.func @transform_7(%arg0: i32) -> (i32, i32) {
    %c0_i32 = arith.constant 0 : i32
    %c0_i32_0 = arith.constant 0 : i32
    return %arg0, %c0_i32 : i32, i32
  }
}

</mosaic_0001>

<bundles_post_ra>
// kernel: tpu_custom_call.1
= control target key start
LH: loop header
LB: loop body
LE: loop exit
PB: predicated region body
PF: predicated region fallthrough
CT: control target
= control target key end

     0   :  { %12 = vsyncpa [#allocation3], 0  ;;  %s860_s0 = inlined_call_operand.hbm [shape: bf16[8,128], index: 0, kind: input, shape index: {}]   ;;  %s861_s1 = inlined_call_operand.hbm [shape: bf16[128,128], index: 1, kind: input, shape index: {}]   ;;  %s862_s2 = inlined_call_operand.vmem [shape: f32[1,128], index: 2, kind: input, shape index: {}]   ;;  %s863_s3 = inlined_call_operand.hbm [shape: bf16[128,128], index: 3, kind: input, shape index: {}]   ;;  %s864_s4 = inlined_call_operand.vmem [shape: f32[1,128], index: 4, kind: input, shape index: {}]   ;;  %s865_s5 = inlined_call_operand.hbm [shape: bf16[128,128], index: 5, kind: input, shape index: {}]   ;;  %s866_s6 = inlined_call_operand.vmem [shape: f32[1,128], index: 6, kind: input, shape index: {}]   ;;  %s867_s7 = inlined_call_operand.hbm [shape: bf16[8,128], index: 7, kind: output, shape index: {}]  }
   0x1   :  { %13 = vsyncpa [#allocation6], 0 }
   0x2   :  { %14 = vsyncpa [#allocation9], 0 }
   0x3   :  { %15 = vsyncpa [#allocation4], 0  ;;  %s703_s24 = smov [#allocation5]   ;;  %s585_s28 = scalar_lea.hbm %s861_s1, 1024 }
   0x4   :  { %s31_s25 = sshll.u32 %s703_s24, 4  ;;  %p586_p0 = scmp.ne.s32.totalorder %s861_s1, %s585_s28  ;;  %s32_s25 = int_to_ptr.vmem [resolvable:$true] %s31_s25 }
   0x5   :  { %p589_p1 = scmp.lt.u32.totalorder %s585_s28, %s861_s1 }
   0x7   :  { %p591_p2 = pnand %p589_p1, %p586_p0 }
   0x9   :  { %594 = shalt.err (!%p591_p2)
}
   0xa   :  { %s595_s10 = scalar_lea.vmem %s32_s25, 1024  ;;  %p600_p4 = scmp.lt.s32.totalorder %s32_s25, %s32_s25 }
   0xb   :  { %p596_p3 = scmp.ne.s32.totalorder %s32_s25, %s595_s10  ;;  %p601_p5 = scmp.lt.s32.totalorder %s595_s10, %s595_s10 }
   0xd   :  { %p602_p6 = por %p601_p5, %p600_p4 }
   0xf   :  { %p603_p7 = pnand %p602_p6, %p596_p3 }
  0x11   :  { %606 = shalt.err (!%p603_p7)
}
  0x12   :  { %s704_s11 = smov 64   ;;  %s705_s12 = smov 4  }
  0x13   :  { %37 = dma.hbm_to_vmem [thread:$0]  %s861_s1, 1024, %s32_s25, [#allocation6], %s704_s11, %s704_s11, %s705_s12  }
  0x14   :  { %s706_s15 = smov [#allocation2]   ;;  %s707_s17 = smov [#allocation7]  }
  0x15   :  { %s22_s16 = sshll.u32 %s706_s15, 4  ;;  %s45_s18 = sshll.u32 %s707_s17, 4  ;;  %s23_s16 = int_to_ptr.vmem [resolvable:$true] %s22_s16  ;;  %s46_s18 = int_to_ptr.vmem [resolvable:$true] %s45_s18 }
  0x16   :  { %s607_s21 = scalar_lea.hbm %s860_s0, 64 }
  0x17   :  { %p608_p8 = scmp.ne.s32.totalorder %s860_s0, %s607_s21  ;;  %p611_p9 = scmp.lt.u32.totalorder %s607_s21, %s860_s0 }
  0x19   :  { %p613_p10 = pnand %p611_p9, %p608_p8 }
  0x1b   :  { %616 = shalt.err (!%p613_p10)
}
  0x1c   :  { %s617_s1 = scalar_lea.vmem %s23_s16, 64  ;;  %p622_p12 = scmp.lt.s32.totalorder %s23_s16, %s23_s16 }
  0x1d   :  { %p618_p11 = scmp.ne.s32.totalorder %s23_s16, %s617_s1  ;;  %p623_p13 = scmp.lt.s32.totalorder %s617_s1, %s617_s1 }
  0x1f   :  { %p624_p0 = por %p623_p13, %p622_p12 }
  0x21   :  { %p625_p1 = pnand %p624_p0, %p618_p11 }
  0x23   :  { %628 = shalt.err (!%p625_p1)
}
  0x24   :  { %25 = dma.hbm_to_vmem [thread:$0]  %s860_s0, 64, %s23_s16, [#allocation3]  }
  0x25   :  { %s629_s30 = scalar_lea.hbm %s863_s3, 1024 }
  0x26   :  { %p630_p2 = scmp.ne.s32.totalorder %s863_s3, %s629_s30  ;;  %p633_p3 = scmp.lt.u32.totalorder %s629_s30, %s863_s3 }
  0x28   :  { %p635_p4 = pnand %p633_p3, %p630_p2 }
  0x2a   :  { %638 = shalt.err (!%p635_p4)
}
  0x2b   :  { %s639_s14 = scalar_lea.vmem %s46_s18, 1024  ;;  %p644_p6 = scmp.lt.s32.totalorder %s46_s18, %s46_s18 }
  0x2c   :  { %p640_p5 = scmp.ne.s32.totalorder %s46_s18, %s639_s14  ;;  %p645_p7 = scmp.lt.s32.totalorder %s639_s14, %s639_s14 }
  0x2e   :  { %p646_p8 = por %p645_p7, %p644_p6 }
  0x30   :  { %p647_p9 = pnand %p646_p8, %p640_p5 }
  0x32   :  { %650 = shalt.err (!%p647_p9)
}
  0x33   :  { %51 = dma.hbm_to_vmem [thread:$0]  %s863_s3, 1024, %s46_s18, [#allocation6], %s704_s11, %s704_s11, %s705_s12  }
  0x34   :  { %s708_s16 = smov [#allocation8]   ;;  %s651_s21 = scalar_lea.hbm %s865_s5, 1024 }
  0x35   :  { %s59_s17 = sshll.u32 %s708_s16, 4  ;;  %p652_p10 = scmp.ne.s32.totalorder %s865_s5, %s651_s21  ;;  %s60_s17 = int_to_ptr.vmem [resolvable:$true] %s59_s17 }
  0x36   :  { %p655_p11 = scmp.lt.u32.totalorder %s651_s21, %s865_s5 }
  0x38   :  { %p657_p12 = pnand %p655_p11, %p652_p10 }
  0x3a   :  { %660 = shalt.err (!%p657_p12)
}
  0x3b   :  { %s661_s1 = scalar_lea.vmem %s60_s17, 1024  ;;  %p666_p0 = scmp.lt.s32.totalorder %s60_s17, %s60_s17 }
  0x3c   :  { %p662_p13 = scmp.ne.s32.totalorder %s60_s17, %s661_s1  ;;  %p667_p1 = scmp.lt.s32.totalorder %s661_s1, %s661_s1 }
  0x3e   :  { %p668_p2 = por %p667_p1, %p666_p0 }
  0x40   :  { %p669_p3 = pnand %p668_p2, %p662_p13 }
  0x42   :  { %672 = shalt.err (!%p669_p3)
}
  0x43   :  { %65 = dma.hbm_to_vmem [thread:$0]  %s865_s5, 1024, %s60_s17, [#allocation9], %s704_s11, %s704_s11, %s705_s12  }
  0x44   :  { %695 = dma.done.wait [#allocation3], 64  }
  0x45   :  { %696 = vsyncadd [#allocation3], 4294967232 }
  0x46   :  { %697 = dma.done.wait [#allocation6], 2048  }
  0x47   :  { %698 = vsyncadd [#allocation6], 4294965248 }
  0x48   :  { %699 = dma.done.wait [#allocation9], 1024  }
  0x49   :  { %700 = vsyncadd [#allocation9], 4294966272  ;;  %v709_v0 = vmov 0.0   ;;  %vm710_vm0 = vmmov 0   ;;  %v561_v1 = vld [vmem:[#allocation5] sm:$0xff]   ;;  %v562_v2 = vld [vmem:[#allocation5 + $0x8] sm:$0xff]  }
  0x4a   :  { %492 = vmatprep.subr.bf16.mxu0 %v709_v0  ;;  %508 = vmatprep.mubr.msk.bf16.mxu0 %vm710_vm0, %v709_v0  ;;  %v563_v3 = vld [vmem:[#allocation5 + $0x10] sm:$0xff]   ;;  %v569_v4 = vld [vmem:[#allocation7] sm:$0xff]   ;;  %v564_v5 = vld [vmem:[#allocation5 + $0x18] sm:$0xff]   ;;  %s711_s28 = smov [#allocation10]  }
  0x4b   :  { %512 = vmatprep.subr.bf16.mxu1 %v709_v0  ;;  %528 = vmatprep.mubr.msk.bf16.mxu1 %vm710_vm0, %v709_v0  ;;  %v570_v6 = vld [vmem:[#allocation7 + $0x8] sm:$0xff]   ;;  %v565_v7 = vld [vmem:[#allocation5 + $0x20] sm:$0xff]   ;;  %v571_v8 = vld [vmem:[#allocation7 + $0x10] sm:$0xff]   ;;  %s427_s29 = sshll.u32 %s711_s28, 4  ;;  %s428_s29 = int_to_ptr.vmem [resolvable:$true] %s427_s29 }
  0x4c   :  { %493 = vmatpush3.bf16.msra.mxu0 %v561_v1  ;;  %513 = vmatpush3.bf16.msra.mxu1 %v569_v4  ;;  %v566_v9 = vld [vmem:[#allocation5 + $0x28] sm:$0xff]   ;;  %v572_v10 = vld [vmem:[#allocation7 + $0x18] sm:$0xff]   ;;  %v567_v11 = vld [vmem:[#allocation5 + $0x30] sm:$0xff]   ;;  %p678_p5 = scmp.lt.s32.totalorder %s428_s29, %s428_s29 }
  0x4d   :  { %494 = vmatprep.subr.bf16.mxu0 %v709_v0  ;;  %514 = vmatprep.subr.bf16.mxu1 %v709_v0  ;;  %v573_v12 = vld [vmem:[#allocation7 + $0x20] sm:$0xff]   ;;  %v568_v13 = vld [vmem:[#allocation5 + $0x38] sm:$0xff]   ;;  %v574_v14 = vld [vmem:[#allocation7 + $0x28] sm:$0xff]  }
  0x4e   :  { %v81_v15 = vld [vmem:[#allocation2] sm:$0xf]  ;;  %v575_v16 = vld [vmem:[#allocation7 + $0x30] sm:$0xff]   ;;  %v577_v18 = vld [vmem:[#allocation8] sm:$0xff]  }
  0x4f   :  { %v576_v17 = vld [vmem:[#allocation7 + $0x38] sm:$0xff]   ;;  %v578_v19 = vld [vmem:[#allocation8 + $0x8] sm:$0xff]   ;;  %v579_v20 = vld [vmem:[#allocation8 + $0x10] sm:$0xff]  }
  0x50   :  { %495 = vmatpush3.bf16.msra.mxu0 %v562_v2  ;;  %515 = vmatpush3.bf16.msra.mxu1 %v570_v6  ;;  %v580_v21 = vld [vmem:[#allocation8 + $0x18] sm:$0xff]   ;;  %v581_v22 = vld [vmem:[#allocation8 + $0x20] sm:$0xff]   ;;  %v582_v23 = vld [vmem:[#allocation8 + $0x28] sm:$0xff]  }
  0x51   :  { %496 = vmatprep.subr.bf16.mxu0 %v709_v0  ;;  %516 = vmatprep.subr.bf16.mxu1 %v709_v0  ;;  %v438_v24 = vld [vmem:[%s862_s2] ss:$0 sm:$0xff]  ;;  %v583_v32 = vld [vmem:[#allocation8 + $0x30] sm:$0xff]  }
  0x52   :  { %v584_v33 = vld [vmem:[#allocation8 + $0x38] sm:$0xff]  }
  0x53   :  { %v447_v34 = vld [vmem:[%s864_s4] ss:$0 sm:$0xff]  ;;  %s673_s4 = scalar_lea.vmem %s428_s29, 64 }
  0x54   :  { %497 = vmatpush3.bf16.msra.mxu0 %v563_v3  ;;  %517 = vmatpush3.bf16.msra.mxu1 %v571_v8  ;;  %v456_v42 = vld [vmem:[%s866_s6] ss:$0 sm:$0xff]  ;;  %p674_p4 = scmp.ne.s32.totalorder %s428_s29, %s673_s4  ;;  %p679_p6 = scmp.lt.s32.totalorder %s673_s4, %s673_s4 }
  0x55   :  { %498 = vmatprep.subr.bf16.mxu0 %v709_v0  ;;  %518 = vmatprep.subr.bf16.mxu1 %v709_v0 }
  0x56   :  { %p680_p7 = por %p679_p6, %p678_p5 }
  0x58   :  { %499 = vmatpush3.bf16.msra.mxu0 %v564_v5  ;;  %519 = vmatpush3.bf16.msra.mxu1 %v572_v10  ;;  %p681_p8 = pnand %p680_p7, %p674_p4 }
  0x59   :  { %500 = vmatprep.subr.bf16.mxu0 %v709_v0  ;;  %520 = vmatprep.subr.bf16.mxu1 %v709_v0 }
  0x5c   :  { %501 = vmatpush3.bf16.msra.mxu0 %v565_v7  ;;  %521 = vmatpush3.bf16.msra.mxu1 %v573_v12 }
  0x5d   :  { %502 = vmatprep.subr.bf16.mxu0 %v709_v0  ;;  %522 = vmatprep.subr.bf16.mxu1 %v709_v0 }
  0x60   :  { %503 = vmatpush3.bf16.msra.mxu0 %v566_v9  ;;  %523 = vmatpush3.bf16.msra.mxu1 %v574_v14 }
  0x61   :  { %504 = vmatprep.subr.bf16.mxu0 %v709_v0  ;;  %524 = vmatprep.subr.bf16.mxu1 %v709_v0 }
  0x64   :  { %505 = vmatpush3.bf16.msra.mxu0 %v567_v11  ;;  %525 = vmatpush3.bf16.msra.mxu1 %v575_v16 }
  0x65   :  { %506 = vmatprep.subr.bf16.mxu0 %v709_v0  ;;  %526 = vmatprep.subr.bf16.mxu1 %v709_v0 }
  0x68   :  { %507 = vmatpush3.bf16.msra.mxu0 %v568_v13  ;;  %527 = vmatpush3.bf16.msra.mxu1 %v576_v17 }
  0x69   :  { %532 = vmatprep.subr.bf16.mxu0 %v709_v0 }
  0x6b   :  { %509 = vmatmul.mubr.bf16.vlgmr.msra.gmra.mrb[0].mxu0 %v81_v15 }
  0x6c   :  { %548 = vmatprep.mubr.msk.bf16.mxu0 %vm710_vm0, %v709_v0  ;;  %533 = vmatpush3.bf16.msra.mxu0 %v577_v18 }
  0x6d   :  { %534 = vmatprep.subr.bf16.mxu0 %v709_v0 }
  0x70   :  { %535 = vmatpush3.bf16.msra.mxu0 %v578_v19 }
  0x71   :  { %536 = vmatprep.subr.bf16.mxu0 %v709_v0 }
  0x74   :  { %537 = vmatpush3.bf16.msra.mxu0 %v579_v20 }
  0x75   :  { %538 = vmatprep.subr.bf16.mxu0 %v709_v0 }
  0x78   :  { %539 = vmatpush3.bf16.msra.mxu0 %v580_v21 }
  0x79   :  { %540 = vmatprep.subr.bf16.mxu0 %v709_v0 }
  0x7c   :  { %541 = vmatpush3.bf16.msra.mxu0 %v581_v22 }
  0x7d   :  { %542 = vmatprep.subr.bf16.mxu0 %v709_v0 }
  0x80   :  { %543 = vmatpush3.bf16.msra.mxu0 %v582_v23 }
  0x81   :  { %544 = vmatprep.subr.bf16.mxu0 %v709_v0 }
  0x84   :  { %545 = vmatpush3.bf16.msra.mxu0 %v583_v32 }
  0x85   :  { %546 = vmatprep.subr.bf16.mxu0 %v709_v0 }
  0x88   :  { %547 = vmatpush3.bf16.msra.mxu0 %v584_v33 }
 0x13e   :  { %v187_v25 = vpop.f32.mrb[0].mxu0 }
 0x13f   :  { %v188_v26 = vadd.f32 %v438_v24, %v187_v25  ;;  %v510_v27 = vpop.f32.mrb[1].mxu0 }
 0x140   :  { %v190_v28 = vpop.f32.mrb[2].mxu0 }
 0x141   :  { %v193_v29 = vmax.f32 %v188_v26, 0.0  ;;  %v511_v30 = vpop.f32.mrb[3].mxu0 }
 0x143   :  { %v194_v31 = vpack.c.bf16 %v193_v29, %v193_v29 }
 0x145   :  { %529 = vmatmul.mubr.bf16.vlgmr.msra.gmra.mrb[0].mxu1 %v194_v31 }
 0x218   :  { %v300_v35 = vpop.f32.mrb[0].mxu1 }
 0x219   :  { %v301_v36 = vadd.f32 %v447_v34, %v300_v35  ;;  %v530_v37 = vpop.f32.mrb[1].mxu1 }
 0x21a   :  { %v303_v38 = vpop.f32.mrb[2].mxu1 }
 0x21b   :  { %v306_v39 = vmax.f32 %v301_v36, 0.0  ;;  %v531_v40 = vpop.f32.mrb[3].mxu1 }
 0x21d   :  { %v307_v41 = vpack.c.bf16 %v306_v39, %v306_v39 }
 0x21f   :  { %549 = vmatmul.mubr.bf16.vlgmr.msra.gmra.mrb[4].mxu0 %v307_v41 }
 0x2f2   :  { %v413_v43 = vpop.f32.mrb[4].mxu0 }
 0x2f3   :  { %v414_v44 = vadd.f32 %v456_v42, %v413_v43  ;;  %v550_v45 = vpop.f32.mrb[5].mxu0 }
 0x2f4   :  { %v416_v46 = vpop.f32.mrb[6].mxu0 }
 0x2f5   :  { %v419_v47 = vpack.c.bf16 %v414_v44, %v414_v44  ;;  %v551_v48 = vpop.f32.mrb[7].mxu0 }
 0x2f7   :  { %420 = vst [vmem:[#allocation10] sm:$0xf] %v419_v47 }
 0x2f8   :  { %684 = shalt.err (!%p681_p8)
}
 0x2f9   :  { %s685_s6 = scalar_lea.hbm %s867_s7, 64 }
 0x2fa   :  { %p686_p9 = scmp.ne.s32.totalorder %s867_s7, %s685_s6  ;;  %p689_p10 = scmp.lt.u32.totalorder %s685_s6, %s867_s7 }
 0x2fc   :  { %p691_p11 = pnand %p689_p10, %p686_p9 }
 0x2fe   :  { %694 = shalt.err (!%p691_p11)
}
 0x2ff   :  { %430 = dma.vmem_to_hbm [thread:$0]  %s428_s29, 64, %s867_s7, [#allocation4]  }
 0x300   :  { %701 = dma.done.wait [#allocation4], 64  }
 0x301   :  { %702 = vsyncadd [#allocation4], 4294967232 }
 0x302   :  { %434 = vsyncpa [#allocation3], 1 }
 0x303   :  { %435 = vsyncpa [#allocation6], 1 }
 0x304   :  { %436 = vsyncpa [#allocation9], 1 }
 0x305   :  { %437 = vsyncpa [#allocation4], 1 }

// kernel: tpu_custom_call.1
= control target key start
LH: loop header
LB: loop body
LE: loop exit
PB: predicated region body
PF: predicated region fallthrough
CT: control target
= control target key end

     0   :  { %12 = vsyncpa [#allocation3], 0  ;;  %s860_s0 = inlined_call_operand.hbm [shape: bf16[8,128], index: 0, kind: input, shape index: {}]   ;;  %s861_s1 = inlined_call_operand.hbm [shape: bf16[128,128], index: 1, kind: input, shape index: {}]   ;;  %s862_s2 = inlined_call_operand.vmem [shape: f32[1,128], index: 2, kind: input, shape index: {}]   ;;  %s863_s3 = inlined_call_operand.hbm [shape: bf16[128,128], index: 3, kind: input, shape index: {}]   ;;  %s864_s4 = inlined_call_operand.vmem [shape: f32[1,128], index: 4, kind: input, shape index: {}]   ;;  %s865_s5 = inlined_call_operand.hbm [shape: bf16[128,128], index: 5, kind: input, shape index: {}]   ;;  %s866_s6 = inlined_call_operand.vmem [shape: f32[1,128], index: 6, kind: input, shape index: {}]   ;;  %s867_s7 = inlined_call_operand.hbm [shape: bf16[8,128], index: 7, kind: output, shape index: {}]  }
   0x1   :  { %13 = vsyncpa [#allocation6], 0 }
   0x2   :  { %14 = vsyncpa [#allocation9], 0 }
   0x3   :  { %15 = vsyncpa [#allocation4], 0  ;;  %s703_s24 = smov [#allocation5]   ;;  %s585_s28 = scalar_lea.hbm %s861_s1, 1024 }
   0x4   :  { %s31_s25 = sshll.u32 %s703_s24, 4  ;;  %p586_p0 = scmp.ne.s32.totalorder %s861_s1, %s585_s28  ;;  %s32_s25 = int_to_ptr.vmem [resolvable:$true] %s31_s25 }
   0x5   :  { %p589_p1 = scmp.lt.u32.totalorder %s585_s28, %s861_s1 }
   0x7   :  { %p591_p2 = pnand %p589_p1, %p586_p0 }
   0x9   :  { %594 = shalt.err (!%p591_p2)
}
   0xa   :  { %s595_s10 = scalar_lea.vmem %s32_s25, 1024  ;;  %p600_p4 = scmp.lt.s32.totalorder %s32_s25, %s32_s25 }
   0xb   :  { %p596_p3 = scmp.ne.s32.totalorder %s32_s25, %s595_s10  ;;  %p601_p5 = scmp.lt.s32.totalorder %s595_s10, %s595_s10 }
   0xd   :  { %p602_p6 = por %p601_p5, %p600_p4 }
   0xf   :  { %p603_p7 = pnand %p602_p6, %p596_p3 }
  0x11   :  { %606 = shalt.err (!%p603_p7)
}
  0x12   :  { %s704_s11 = smov 64   ;;  %s705_s12 = smov 4  }
  0x13   :  { %37 = dma.hbm_to_vmem [thread:$0]  %s861_s1, 1024, %s32_s25, [#allocation6], %s704_s11, %s704_s11, %s705_s12  }
  0x14   :  { %s706_s15 = smov [#allocation2]   ;;  %s707_s17 = smov [#allocation7]  }
  0x15   :  { %s22_s16 = sshll.u32 %s706_s15, 4  ;;  %s45_s18 = sshll.u32 %s707_s17, 4  ;;  %s23_s16 = int_to_ptr.vmem [resolvable:$true] %s22_s16  ;;  %s46_s18 = int_to_ptr.vmem [resolvable:$true] %s45_s18 }
  0x16   :  { %s607_s21 = scalar_lea.hbm %s860_s0, 64 }
  0x17   :  { %p608_p8 = scmp.ne.s32.totalorder %s860_s0, %s607_s21  ;;  %p611_p9 = scmp.lt.u32.totalorder %s607_s21, %s860_s0 }
  0x19   :  { %p613_p10 = pnand %p611_p9, %p608_p8 }
  0x1b   :  { %616 = shalt.err (!%p613_p10)
}
  0x1c   :  { %s617_s1 = scalar_lea.vmem %s23_s16, 64  ;;  %p622_p12 = scmp.lt.s32.totalorder %s23_s16, %s23_s16 }
  0x1d   :  { %p618_p11 = scmp.ne.s32.totalorder %s23_s16, %s617_s1  ;;  %p623_p13 = scmp.lt.s32.totalorder %s617_s1, %s617_s1 }
  0x1f   :  { %p624_p0 = por %p623_p13, %p622_p12 }
  0x21   :  { %p625_p1 = pnand %p624_p0, %p618_p11 }
  0x23   :  { %628 = shalt.err (!%p625_p1)
}
  0x24   :  { %25 = dma.hbm_to_vmem [thread:$0]  %s860_s0, 64, %s23_s16, [#allocation3]  }
  0x25   :  { %s629_s30 = scalar_lea.hbm %s863_s3, 1024 }
  0x26   :  { %p630_p2 = scmp.ne.s32.totalorder %s863_s3, %s629_s30  ;;  %p633_p3 = scmp.lt.u32.totalorder %s629_s30, %s863_s3 }
  0x28   :  { %p635_p4 = pnand %p633_p3, %p630_p2 }
  0x2a   :  { %638 = shalt.err (!%p635_p4)
}
  0x2b   :  { %s639_s14 = scalar_lea.vmem %s46_s18, 1024  ;;  %p644_p6 = scmp.lt.s32.totalorder %s46_s18, %s46_s18 }
  0x2c   :  { %p640_p5 = scmp.ne.s32.totalorder %s46_s18, %s639_s14  ;;  %p645_p7 = scmp.lt.s32.totalorder %s639_s14, %s639_s14 }
  0x2e   :  { %p646_p8 = por %p645_p7, %p644_p6 }
  0x30   :  { %p647_p9 = pnand %p646_p8, %p640_p5 }
  0x32   :  { %650 = shalt.err (!%p647_p9)
}
  0x33   :  { %51 = dma.hbm_to_vmem [thread:$0]  %s863_s3, 1024, %s46_s18, [#allocation6], %s704_s11, %s704_s11, %s705_s12  }
  0x34   :  { %s708_s16 = smov [#allocation8]   ;;  %s651_s21 = scalar_lea.hbm %s865_s5, 1024 }
  0x35   :  { %s59_s17 = sshll.u32 %s708_s16, 4  ;;  %p652_p10 = scmp.ne.s32.totalorder %s865_s5, %s651_s21  ;;  %s60_s17 = int_to_ptr.vmem [resolvable:$true] %s59_s17 }
  0x36   :  { %p655_p11 = scmp.lt.u32.totalorder %s651_s21, %s865_s5 }
  0x38   :  { %p657_p12 = pnand %p655_p11, %p652_p10 }
  0x3a   :  { %660 = shalt.err (!%p657_p12)
}
  0x3b   :  { %s661_s1 = scalar_lea.vmem %s60_s17, 1024  ;;  %p666_p0 = scmp.lt.s32.totalorder %s60_s17, %s60_s17 }
  0x3c   :  { %p662_p13 = scmp.ne.s32.totalorder %s60_s17, %s661_s1  ;;  %p667_p1 = scmp.lt.s32.totalorder %s661_s1, %s661_s1 }
  0x3e   :  { %p668_p2 = por %p667_p1, %p666_p0 }
  0x40   :  { %p669_p3 = pnand %p668_p2, %p662_p13 }
  0x42   :  { %672 = shalt.err (!%p669_p3)
}
  0x43   :  { %65 = dma.hbm_to_vmem [thread:$0]  %s865_s5, 1024, %s60_s17, [#allocation9], %s704_s11, %s704_s11, %s705_s12  }
  0x44   :  { %695 = dma.done.wait [#allocation3], 64  }
  0x45   :  { %696 = vsyncadd [#allocation3], 4294967232 }
  0x46   :  { %697 = dma.done.wait [#allocation6], 2048  }
  0x47   :  { %698 = vsyncadd [#allocation6], 4294965248 }
  0x48   :  { %699 = dma.done.wait [#allocation9], 1024  }
  0x49   :  { %700 = vsyncadd [#allocation9], 4294966272  ;;  %v709_v0 = vmov 0.0   ;;  %vm710_vm0 = vmmov 0   ;;  %v561_v1 = vld [vmem:[#allocation5] sm:$0xff]   ;;  %v562_v2 = vld [vmem:[#allocation5 + $0x8] sm:$0xff]  }
  0x4a   :  { %492 = vmatprep.subr.bf16.mxu0 %v709_v0  ;;  %508 = vmatprep.mubr.msk.bf16.mxu0 %vm710_vm0, %v709_v0  ;;  %v563_v3 = vld [vmem:[#allocation5 + $0x10] sm:$0xff]   ;;  %v569_v4 = vld [vmem:[#allocation7] sm:$0xff]   ;;  %v564_v5 = vld [vmem:[#allocation5 + $0x18] sm:$0xff]   ;;  %s711_s28 = smov [#allocation10]  }
  0x4b   :  { %512 = vmatprep.subr.bf16.mxu1 %v709_v0  ;;  %528 = vmatprep.mubr.msk.bf16.mxu1 %vm710_vm0, %v709_v0  ;;  %v570_v6 = vld [vmem:[#allocation7 + $0x8] sm:$0xff]   ;;  %v565_v7 = vld [vmem:[#allocation5 + $0x20] sm:$0xff]   ;;  %v571_v8 = vld [vmem:[#allocation7 + $0x10] sm:$0xff]   ;;  %s427_s29 = sshll.u32 %s711_s28, 4  ;;  %s428_s29 = int_to_ptr.vmem [resolvable:$true] %s427_s29 }
  0x4c   :  { %493 = vmatpush3.bf16.msra.mxu0 %v561_v1  ;;  %513 = vmatpush3.bf16.msra.mxu1 %v569_v4  ;;  %v566_v9 = vld [vmem:[#allocation5 + $0x28] sm:$0xff]   ;;  %v572_v10 = vld [vmem:[#allocation7 + $0x18] sm:$0xff]   ;;  %v567_v11 = vld [vmem:[#allocation5 + $0x30] sm:$0xff]   ;;  %p678_p5 = scmp.lt.s32.totalorder %s428_s29, %s428_s29 }
  0x4d   :  { %494 = vmatprep.subr.bf16.mxu0 %v709_v0  ;;  %514 = vmatprep.subr.bf16.mxu1 %v709_v0  ;;  %v573_v12 = vld [vmem:[#allocation7 + $0x20] sm:$0xff]   ;;  %v568_v13 = vld [vmem:[#allocation5 + $0x38] sm:$0xff]   ;;  %v574_v14 = vld [vmem:[#allocation7 + $0x28] sm:$0xff]  }
  0x4e   :  { %v81_v15 = vld [vmem:[#allocation2] sm:$0xf]  ;;  %v575_v16 = vld [vmem:[#allocation7 + $0x30] sm:$0xff]   ;;  %v577_v18 = vld [vmem:[#allocation8] sm:$0xff]  }
  0x4f   :  { %v576_v17 = vld [vmem:[#allocation7 + $0x38] sm:$0xff]   ;;  %v578_v19 = vld [vmem:[#allocation8 + $0x8] sm:$0xff]   ;;  %v579_v20 = vld [vmem:[#allocation8 + $0x10] sm:$0xff]  }
  0x50   :  { %495 = vmatpush3.bf16.msra.mxu0 %v562_v2  ;;  %515 = vmatpush3.bf16.msra.mxu1 %v570_v6  ;;  %v580_v21 = vld [vmem:[#allocation8 + $0x18] sm:$0xff]   ;;  %v581_v22 = vld [vmem:[#allocation8 + $0x20] sm:$0xff]   ;;  %v582_v23 = vld [vmem:[#allocation8 + $0x28] sm:$0xff]  }
  0x51   :  { %496 = vmatprep.subr.bf16.mxu0 %v709_v0  ;;  %516 = vmatprep.subr.bf16.mxu1 %v709_v0  ;;  %v438_v24 = vld [vmem:[%s862_s2] ss:$0 sm:$0xff]  ;;  %v583_v32 = vld [vmem:[#allocation8 + $0x30] sm:$0xff]  }
  0x52   :  { %v584_v33 = vld [vmem:[#allocation8 + $0x38] sm:$0xff]  }
  0x53   :  { %v447_v34 = vld [vmem:[%s864_s4] ss:$0 sm:$0xff]  ;;  %s673_s4 = scalar_lea.vmem %s428_s29, 64 }
  0x54   :  { %497 = vmatpush3.bf16.msra.mxu0 %v563_v3  ;;  %517 = vmatpush3.bf16.msra.mxu1 %v571_v8  ;;  %v456_v42 = vld [vmem:[%s866_s6] ss:$0 sm:$0xff]  ;;  %p674_p4 = scmp.ne.s32.totalorder %s428_s29, %s673_s4  ;;  %p679_p6 = scmp.lt.s32.totalorder %s673_s4, %s673_s4 }
  0x55   :  { %498 = vmatprep.subr.bf16.mxu0 %v709_v0  ;;  %518 = vmatprep.subr.bf16.mxu1 %v709_v0 }
  0x56   :  { %p680_p7 = por %p679_p6, %p678_p5 }
  0x58   :  { %499 = vmatpush3.bf16.msra.mxu0 %v564_v5  ;;  %519 = vmatpush3.bf16.msra.mxu1 %v572_v10  ;;  %p681_p8 = pnand %p680_p7, %p674_p4 }
  0x59   :  { %500 = vmatprep.subr.bf16.mxu0 %v709_v0  ;;  %520 = vmatprep.subr.bf16.mxu1 %v709_v0 }
  0x5c   :  { %501 = vmatpush3.bf16.msra.mxu0 %v565_v7  ;;  %521 = vmatpush3.bf16.msra.mxu1 %v573_v12 }
  0x5d   :  { %502 = vmatprep.subr.bf16.mxu0 %v709_v0  ;;  %522 = vmatprep.subr.bf16.mxu1 %v709_v0 }
  0x60   :  { %503 = vmatpush3.bf16.msra.mxu0 %v566_v9  ;;  %523 = vmatpush3.bf16.msra.mxu1 %v574_v14 }
  0x61   :  { %504 = vmatprep.subr.bf16.mxu0 %v709_v0  ;;  %524 = vmatprep.subr.bf16.mxu1 %v709_v0 }
  0x64   :  { %505 = vmatpush3.bf16.msra.mxu0 %v567_v11  ;;  %525 = vmatpush3.bf16.msra.mxu1 %v575_v16 }
  0x65   :  { %506 = vmatprep.subr.bf16.mxu0 %v709_v0  ;;  %526 = vmatprep.subr.bf16.mxu1 %v709_v0 }
  0x68   :  { %507 = vmatpush3.bf16.msra.mxu0 %v568_v13  ;;  %527 = vmatpush3.bf16.msra.mxu1 %v576_v17 }
  0x69   :  { %532 = vmatprep.subr.bf16.mxu0 %v709_v0 }
  0x6b   :  { %509 = vmatmul.mubr.bf16.vlgmr.msra.gmra.mrb[0].mxu0 %v81_v15 }
  0x6c   :  { %548 = vmatprep.mubr.msk.bf16.mxu0 %vm710_vm0, %v709_v0  ;;  %533 = vmatpush3.bf16.msra.mxu0 %v577_v18 }
  0x6d   :  { %534 = vmatprep.subr.bf16.mxu0 %v709_v0 }
  0x70   :  { %535 = vmatpush3.bf16.msra.mxu0 %v578_v19 }
  0x71   :  { %536 = vmatprep.subr.bf16.mxu0 %v709_v0 }
  0x74   :  { %537 = vmatpush3.bf16.msra.mxu0 %v579_v20 }
  0x75   :  { %538 = vmatprep.subr.bf16.mxu0 %v709_v0 }
  0x78   :  { %539 = vmatpush3.bf16.msra.mxu0 %v580_v21 }
  0x79   :  { %540 = vmatprep.subr.bf16.mxu0 %v709_v0 }
  0x7c   :  { %541 = vmatpush3.bf16.msra.mxu0 %v581_v22 }
  0x7d   :  { %542 = vmatprep.subr.bf16.mxu0 %v709_v0 }
  0x80   :  { %543 = vmatpush3.bf16.msra.mxu0 %v582_v23 }
  0x81   :  { %544 = vmatprep.subr.bf16.mxu0 %v709_v0 }
  0x84   :  { %545 = vmatpush3.bf16.msra.mxu0 %v583_v32 }
  0x85   :  { %546 = vmatprep.subr.bf16.mxu0 %v709_v0 }
  0x88   :  { %547 = vmatpush3.bf16.msra.mxu0 %v584_v33 }
 0x13e   :  { %v187_v25 = vpop.f32.mrb[0].mxu0 }
 0x13f   :  { %v188_v26 = vadd.f32 %v438_v24, %v187_v25  ;;  %v510_v27 = vpop.f32.mrb[1].mxu0 }
 0x140   :  { %v190_v28 = vpop.f32.mrb[2].mxu0 }
 0x141   :  { %v193_v29 = vmax.f32 %v188_v26, 0.0  ;;  %v511_v30 = vpop.f32.mrb[3].mxu0 }
 0x143   :  { %v194_v31 = vpack.c.bf16 %v193_v29, %v193_v29 }
 0x145   :  { %529 = vmatmul.mubr.bf16.vlgmr.msra.gmra.mrb[0].mxu1 %v194_v31 }
 0x218   :  { %v300_v35 = vpop.f32.mrb[0].mxu1 }
 0x219   :  { %v301_v36 = vadd.f32 %v447_v34, %v300_v35  ;;  %v530_v37 = vpop.f32.mrb[1].mxu1 }
 0x21a   :  { %v303_v38 = vpop.f32.mrb[2].mxu1 }
 0x21b   :  { %v306_v39 = vmax.f32 %v301_v36, 0.0  ;;  %v531_v40 = vpop.f32.mrb[3].mxu1 }
 0x21d   :  { %v307_v41 = vpack.c.bf16 %v306_v39, %v306_v39 }
 0x21f   :  { %549 = vmatmul.mubr.bf16.vlgmr.msra.gmra.mrb[4].mxu0 %v307_v41 }
 0x2f2   :  { %v413_v43 = vpop.f32.mrb[4].mxu0 }
 0x2f3   :  { %v414_v44 = vadd.f32 %v456_v42, %v413_v43  ;;  %v550_v45 = vpop.f32.mrb[5].mxu0 }
 0x2f4   :  { %v416_v46 = vpop.f32.mrb[6].mxu0 }
 0x2f5   :  { %v419_v47 = vpack.c.bf16 %v414_v44, %v414_v44  ;;  %v551_v48 = vpop.f32.mrb[7].mxu0 }
 0x2f7   :  { %420 = vst [vmem:[#allocation10] sm:$0xf] %v419_v47 }
 0x2f8   :  { %684 = shalt.err (!%p681_p8)
}
 0x2f9   :  { %s685_s6 = scalar_lea.hbm %s867_s7, 64 }
 0x2fa   :  { %p686_p9 = scmp.ne.s32.totalorder %s867_s7, %s685_s6  ;;  %p689_p10 = scmp.lt.u32.totalorder %s685_s6, %s867_s7 }
 0x2fc   :  { %p691_p11 = pnand %p689_p10, %p686_p9 }
 0x2fe   :  { %694 = shalt.err (!%p691_p11)
}
 0x2ff   :  { %430 = dma.vmem_to_hbm [thread:$0]  %s428_s29, 64, %s867_s7, [#allocation4]  }
 0x300   :  { %701 = dma.done.wait [#allocation4], 64  }
 0x301   :  { %702 = vsyncadd [#allocation4], 4294967232 }
 0x302   :  { %434 = vsyncpa [#allocation3], 1 }
 0x303   :  { %435 = vsyncpa [#allocation6], 1 }
 0x304   :  { %436 = vsyncpa [#allocation9], 1 }
 0x305   :  { %437 = vsyncpa [#allocation4], 1 }

</bundles_post_ra>
